<compile_context>
chip_gen: v7x
topology: tpu7x:2x2x1
jax: 0.10.0
libtpu: 0.0.40
codegen_flags: <defaults>
</compile_context>

<pallas_src>
import jax
import jax.numpy as jnp
from jax.experimental import pallas as pl
from jax.experimental.pallas import tpu as pltpu


def _round_up(x, m):
    return (x + m - 1) // m * m


def _vmem_budget_bytes():
    """Per-core VMEM capacity minus ~8 MiB headroom (portable v5e/v6e/v7x)."""
    try:
        cap = int(pltpu.get_tpu_info().vmem_capacity_bytes)
    except Exception:
        cap = 64 * 1024 * 1024  # conservative fallback: v7x per-TensorCore VMEM
    return max(cap - 8 * 1024 * 1024, 16 * 1024 * 1024)


def _has_bf16_vpu():
    # v5e and older have no bf16 VPU path; keep the elementwise epilogue in f32 there.
    try:
        kind = jax.devices()[0].device_kind.lower()
    except Exception:
        return True
    return not any(tag in kind for tag in ("v2", "v3", "v4", "v5"))


def _make_kernel(act_dtype):
    def kernel(x_ref, w1_ref, b1_ref, w2_ref, b2_ref, o_ref, acc_ref):
        j = pl.program_id(1)  # hidden-dim (reduction) axis

        @pl.when(j == 0)
        def _():
            acc_ref[...] = jnp.zeros_like(acc_ref)

        # Layer 1 for this H chunk: bf16 MXU inputs, f32 accumulation.
        h = jnp.dot(x_ref[...], w1_ref[...], preferred_element_type=jnp.float32)
        # Bias + ReLU epilogue in act_dtype (bf16 on v6e/v7x, f32 on v5e).
        h = jnp.maximum(h.astype(act_dtype) + b1_ref[...], 0.0)
        # Layer 2 partial product over this H chunk, accumulated in f32.
        acc_ref[...] += jnp.dot(h.astype(w2_ref.dtype), w2_ref[...],
                                preferred_element_type=jnp.float32)

        @pl.when(j == pl.num_programs(1) - 1)
        def _():
            o_ref[...] = (acc_ref[...] + b2_ref[...]).astype(o_ref.dtype)

    return kernel


def prepare_params(w1, b1, w2, b2, *, compute_dtype=jnp.bfloat16, act_dtype=None):
    """Pad feature dims to 128 lanes and cast weights ONCE (outside per-call path).

    w1: (D_in, H), b1: (H,) or (1, H), w2: (H, D_out), b2: (D_out,) or (1, D_out).
    """
    if act_dtype is None:
        act_dtype = jnp.bfloat16 if _has_bf16_vpu() else jnp.float32

    D_in, H = w1.shape
    D_out = w2.shape[1]
    D_in_p, H_p, D_out_p = (_round_up(d, 128) for d in (D_in, H, D_out))

    b1 = jnp.reshape(b1, (1, H))
    b2 = jnp.reshape(b2, (1, D_out))

    # Zero padding preserves the math exactly: extra input columns hit zero
    # weight rows, extra hidden units get zero weights and zero bias (ReLU(0)=0),
    # extra output columns are sliced off after the call.
    w1p = jnp.zeros((D_in_p, H_p), compute_dtype).at[:D_in, :H].set(
        w1.astype(compute_dtype))
    b1p = jnp.zeros((1, H_p), act_dtype).at[:, :H].set(b1.astype(act_dtype))
    w2p = jnp.zeros((H_p, D_out_p), compute_dtype).at[:H, :D_out].set(
        w2.astype(compute_dtype))
    b2p = jnp.zeros((1, D_out_p), jnp.float32).at[:, :D_out].set(
        b2.astype(jnp.float32))

    return dict(w1=w1p, b1=b1p, w2=w2p, b2=b2p,
                dims=(D_in, H, D_out), padded=(D_in_p, H_p, D_out_p),
                compute_dtype=compute_dtype, act_dtype=act_dtype)


def two_layer_net(x, params, *, tile_n=512):
    """Forward pass. x: (N, D_in) -> (N, D_out), dtype preserved."""
    D_in, H, D_out = params["dims"]
    D_in_p, H_p, D_out_p = params["padded"]
    compute_dtype = params["compute_dtype"]
    act_dtype = params["act_dtype"]
    w1p, b1p, w2p, b2p = params["w1"], params["b1"], params["w2"], params["b2"]

    N = x.shape[0]
    out_dtype = x.dtype
    bpe = jnp.dtype(compute_dtype).itemsize
    b1_bpe = jnp.dtype(act_dtype).itemsize
    out_bpe = jnp.dtype(out_dtype).itemsize

    # ---- batch tiling: large tiles amortize ~0.35us/grid-step and feed the MXU
    # with big M; a 128-row floor keeps MXU utilization and remainder waste sane.
    tile_n = max(128, min(tile_n, _round_up(N, 128)))
    N_p = _round_up(N, tile_n)
    n_batch_steps = N_p // tile_n
    # TODO(synk): on v7x force >= 2 batch grid steps so both TensorCores get work
    # when N is just under one tile.

    budget = _vmem_budget_bytes()

    # ---- hidden tiling: keep weights fully resident (single-buffered) when they
    # fit the per-core VMEM budget; otherwise tile H over an "arbitrary" axis.
    io_bytes = 2 * tile_n * (D_in_p * bpe + D_out_p * out_bpe)         # x/out, double-buffered
    acc_bytes = tile_n * D_out_p * 4                                   # f32 scratch accumulator
    fixed = io_bytes + acc_bytes + D_out_p * 4                         # + resident b2
    resident_w = (D_in_p * H_p + H_p * D_out_p) * bpe + H_p * b1_bpe   # single-buffered weights
    hidden_live = tile_n * H_p * 4                                     # f32 layer-1 accumulator

    if fixed + resident_w + hidden_live <= budget:
        tile_h = H_p
    else:
        per_h = 2 * (D_in_p + D_out_p) * bpe + 2 * b1_bpe + tile_n * 4
        avail = max(budget - fixed, 0)
        max_h = max(128, (avail // per_h) // 128 * 128)
        # Largest multiple-of-128 divisor of H_p that is <= max_h.
        tile_h = 128
        d = H_p // 128
        for k in range(d, 0, -1):
            if d % k == 0 and 128 * k <= max_h:
                tile_h = 128 * k
                break
    n_h_steps = H_p // tile_h
    resident_weights = n_h_steps == 1

    # ---- pad/cast x only when needed (weights were prepared once already).
    if N == N_p and D_in == D_in_p and x.dtype == compute_dtype:
        xp = x
    else:
        xp = jnp.zeros((N_p, D_in_p), compute_dtype).at[:N, :D_in].set(
            x.astype(compute_dtype))

    # Constant-index blocks are single-buffered (second pipeline buffer = dead VMEM).
    def _wspec(shape, idx):
        if resident_weights:
            return pl.BlockSpec(shape, idx, pipeline_mode=pl.Buffered(1))
        return pl.BlockSpec(shape, idx)

    in_specs = [
        pl.BlockSpec((tile_n, D_in_p), lambda i, j: (i, 0)),   # x tile, pipelined over batch
        _wspec((D_in_p, tile_h), lambda i, j: (0, j)),          # W1 chunk
        _wspec((1, tile_h), lambda i, j: (0, j)),               # b1 chunk
        _wspec((tile_h, D_out_p), lambda i, j: (j, 0)),         # W2 chunk
        pl.BlockSpec((1, D_out_p), lambda i, j: (0, 0),
                     pipeline_mode=pl.Buffered(1)),             # b2 resident (constant index)
    ]
    out_specs = pl.BlockSpec((tile_n, D_out_p), lambda i, j: (i, 0))

    if resident_weights:
        need = fixed + resident_w + hidden_live
    else:
        need = fixed + (2 * (D_in_p * tile_h + tile_h * D_out_p) * bpe
                        + 2 * tile_h * b1_bpe + tile_n * tile_h * 4)
    vmem_limit = int(min(budget, max(int(need * 1.25), 32 * 1024 * 1024)))

    cost = pl.CostEstimate(
        flops=2 * N_p * (D_in_p * H_p + H_p * D_out_p),
        transcendentals=0,
        bytes_accessed=(xp.size * bpe + w1p.size * bpe + w2p.size * bpe
                        + b1p.size * b1_bpe + b2p.size * 4 + N_p * D_out_p * out_bpe),
    )

    out = pl.pallas_call(
        _make_kernel(act_dtype),
        out_shape=jax.ShapeDtypeStruct((N_p, D_out_p), out_dtype),
        grid=(n_batch_steps, n_h_steps),
        in_specs=in_specs,
        out_specs=out_specs,
        scratch_shapes=[pltpu.VMEM((tile_n, D_out_p), jnp.float32)],
        compiler_params=pltpu.CompilerParams(
            dimension_semantics=("parallel", "arbitrary"),
            vmem_limit_bytes=vmem_limit,
        ),
        cost_estimate=cost,
    )(xp, w1p, b1p, w2p, b2p)

    if N_p == N and D_out_p == D_out:
        return out
    return out[:N, :D_out]


if __name__ == "__main__":
    # Small shapes consistent with the module's forward: x (N, D_in) -> y (N, D_out)
    N, D_in, H, D_out = 8, 32, 64, 16

    key = jax.random.PRNGKey(0)
    kx, kw1, kb1, kw2, kb2 = jax.random.split(key, 5)

    x = jax.random.normal(kx, (N, D_in), dtype=jnp.float32)

    # Deterministic parameter init (PyTorch Linear-style uniform bounds),
    # stored pre-transposed as (in, out) for the kernel layout above.
    bound1 = 1.0 / jnp.sqrt(D_in)
    w1 = jax.random.uniform(kw1, (D_in, H), jnp.float32, -bound1, bound1)
    b1 = jax.random.uniform(kb1, (1, H), jnp.float32, -bound1, bound1)

    bound2 = 1.0 / jnp.sqrt(H)
    w2 = jax.random.uniform(kw2, (H, D_out), jnp.float32, -bound2, bound2)
    b2 = jax.random.uniform(kb2, (1, D_out), jnp.float32, -bound2, bound2)

    # Pad + cast the weights once (hoisted out of the per-call path).
    params = prepare_params(w1, b1, w2, b2)

    y = two_layer_net(x, params)
    jax.block_until_ready(y)
    assert y.shape == (N, D_out)
    assert y.dtype == x.dtype

    # Reference matched to the kernel's numerics (bf16 MXU inputs, f32 accum,
    # act_dtype epilogue, bf16 input to the second matmul).
    act_dtype = params["act_dtype"]
    cdt = params["compute_dtype"]
    xb = x.astype(cdt).astype(jnp.float32)
    w1b = w1.astype(cdt).astype(jnp.float32)
    w2b = w2.astype(cdt).astype(jnp.float32)
    h_acc = xb @ w1b
    h_ref = jnp.maximum(h_acc.astype(act_dtype) + b1.astype(act_dtype),
                        jnp.zeros((), act_dtype))
    y_ref = h_ref.astype(cdt).astype(jnp.float32) @ w2b + b2
    assert jnp.allclose(y, y_ref, atol=2e-2, rtol=2e-2)

    # Sanity-check against the pure-f32 PyTorch-equivalent reference (looser tol).
    y_ref_f32 = jnp.maximum(x @ w1 + b1, 0.0) @ w2 + b2
    assert jnp.allclose(y, y_ref_f32, atol=5e-2, rtol=5e-2)

    print("KERNEL_OK")
</pallas_src>

<mosaic_0001>
module attributes {stable_mosaic.version = 11 : i64} {
  func.func @kernel(%arg0: i32, %arg1: i32, %arg2: memref<128x128xbf16, #tpu.memory_space<vmem>>, %arg3: memref<128x128xbf16, #tpu.memory_space<vmem>>, %arg4: memref<1x128xbf16, #tpu.memory_space<vmem>>, %arg5: memref<128x128xbf16, #tpu.memory_space<vmem>>, %arg6: memref<1x128xf32, #tpu.memory_space<vmem>>, %arg7: memref<128x128xf32, #tpu.memory_space<vmem>>, %arg8: memref<128x128xf32, #tpu.memory_space<vmem>>) attributes {dimension_semantics = [#tpu.dimension_semantics<parallel>, #tpu.dimension_semantics<arbitrary>], iteration_bounds = array<i64: 1, 1>, scalar_prefetch = 0 : i64, scratch_operands = 1 : i64, tpu.core_type = #tpu.core_type<tc>, window_params = [{transform_indices = @transform_0, window_bounds = array<i64: 128, 128>}, {pipeline_mode = #tpu.pipeline_mode<synchronous>, transform_indices = @transform_1, window_bounds = array<i64: 128, 128>}, {pipeline_mode = #tpu.pipeline_mode<synchronous>, transform_indices = @transform_2, window_bounds = array<i64: 1, 128>}, {pipeline_mode = #tpu.pipeline_mode<synchronous>, transform_indices = @transform_3, window_bounds = array<i64: 128, 128>}, {pipeline_mode = #tpu.pipeline_mode<synchronous>, transform_indices = @transform_4, window_bounds = array<i64: 1, 128>}, {transform_indices = @transform_5, window_bounds = array<i64: 128, 128>}]} {
    %c0_i32 = arith.constant 0 : i32
    %0 = arith.cmpi eq, %arg1, %c0_i32 : i32
    %1 = arith.extui %0 : i1 to i32
    %c0_i32_0 = arith.constant 0 : i32
    %2 = arith.cmpi ne, %1, %c0_i32_0 : i32
    scf.if %2 {
      %cst_16 = arith.constant 0.000000e+00 : f32
      %20 = vector.broadcast %cst_16 : f32 to vector<128x128xf32>
      %c0_17 = arith.constant 0 : index
      %c0_18 = arith.constant 0 : index
      %21 = vector.load %arg8[%c0_17, %c0_18] : memref<128x128xf32, #tpu.memory_space<vmem>>, vector<128x128xf32>
      tpu.vector_store %arg8[%c0_17, %c0_18], %20 {strides = array<i32>} : memref<128x128xf32, #tpu.memory_space<vmem>>, vector<128x128xf32>,
    } else {
    }
    %c0 = arith.constant 0 : index
    %c0_1 = arith.constant 0 : index
    %3 = vector.load %arg2[%c0, %c0_1] : memref<128x128xbf16, #tpu.memory_space<vmem>>, vector<128x128xbf16>
    %c0_2 = arith.constant 0 : index
    %c0_3 = arith.constant 0 : index
    %4 = vector.load %arg3[%c0_2, %c0_3] : memref<128x128xbf16, #tpu.memory_space<vmem>>, vector<128x128xbf16>
    %cst = arith.constant dense<0.000000e+00> : vector<128x128xf32>
    %5 = tpu.matmul %3, %4, %cst {dimension_numbers = #tpu.dot_dimension_numbers<[1], [0], [0], [1], [0, 0, 1, 1], [], []>} : vector<128x128xbf16>, vector<128x128xbf16>, vector<128x128xf32> -> vector<128x128xf32>
    %6 = arith.truncf %5 : vector<128x128xf32> to vector<128x128xbf16>
    %c0_4 = arith.constant 0 : index
    %c0_5 = arith.constant 0 : index
    %7 = vector.load %arg4[%c0_4, %c0_5] : memref<1x128xbf16, #tpu.memory_space<vmem>>, vector<1x128xbf16>
    %8 = vector.broadcast %7 : vector<1x128xbf16> to vector<128x128xbf16>
    %9 = arith.addf %6, %8 : vector<128x128xbf16>
    %cst_6 = arith.constant 0.000000e+00 : bf16
    %10 = vector.broadcast %cst_6 : bf16 to vector<128x128xbf16>
    %11 = arith.maximumf %9, %10 : vector<128x128xbf16>
    %c0_7 = arith.constant 0 : index
    %c0_8 = arith.constant 0 : index
    %12 = vector.load %arg8[%c0_7, %c0_8] : memref<128x128xf32, #tpu.memory_space<vmem>>, vector<128x128xf32>
    %c0_9 = arith.constant 0 : index
    %c0_10 = arith.constant 0 : index
    %13 = vector.load %arg5[%c0_9, %c0_10] : memref<128x128xbf16, #tpu.memory_space<vmem>>, vector<128x128xbf16>
    %cst_11 = arith.constant dense<0.000000e+00> : vector<128x128xf32>
    %14 = tpu.matmul %11, %13, %cst_11 {dimension_numbers = #tpu.dot_dimension_numbers<[1], [0], [0], [1], [0, 0, 1, 1], [], []>} : vector<128x128xbf16>, vector<128x128xbf16>, vector<128x128xf32> -> vector<128x128xf32>
    %15 = arith.addf %12, %14 : vector<128x128xf32>
    %c0_12 = arith.constant 0 : index
    %c0_13 = arith.constant 0 : index
    %16 = vector.load %arg8[%c0_12, %c0_13] : memref<128x128xf32, #tpu.memory_space<vmem>>, vector<128x128xf32>
    tpu.vector_store %arg8[%c0_12, %c0_13], %15 {strides = array<i32>} : memref<128x128xf32, #tpu.memory_space<vmem>>, vector<128x128xf32>,
    %c0_i32_14 = arith.constant 0 : i32
    %17 = arith.cmpi eq, %arg1, %c0_i32_14 : i32
    %18 = arith.extui %17 : i1 to i32
    %c0_i32_15 = arith.constant 0 : i32
    %19 = arith.cmpi ne, %18, %c0_i32_15 : i32
    scf.if %19 {
      %c0_16 = arith.constant 0 : index
      %c0_17 = arith.constant 0 : index
      %20 = vector.load %arg8[%c0_16, %c0_17] : memref<128x128xf32, #tpu.memory_space<vmem>>, vector<128x128xf32>
      %c0_18 = arith.constant 0 : index
      %c0_19 = arith.constant 0 : index
      %21 = vector.load %arg6[%c0_18, %c0_19] : memref<1x128xf32, #tpu.memory_space<vmem>>, vector<1x128xf32>
      %22 = vector.broadcast %21 : vector<1x128xf32> to vector<128x128xf32>
      %23 = arith.addf %20, %22 : vector<128x128xf32>
      %c0_20 = arith.constant 0 : index
      %c0_21 = arith.constant 0 : index
      %24 = vector.load %arg7[%c0_20, %c0_21] : memref<128x128xf32, #tpu.memory_space<vmem>>, vector<128x128xf32>
      tpu.vector_store %arg7[%c0_20, %c0_21], %23 {strides = array<i32>} : memref<128x128xf32, #tpu.memory_space<vmem>>, vector<128x128xf32>,
    } else {
    }
    return
  }
  func.func @transform_0(%arg0: i32, %arg1: i32) -> (i32, i32) {
    %c0_i32 = arith.constant 0 : i32
    %c0_i32_0 = arith.constant 0 : i32
    return %arg0, %c0_i32 : i32, i32
  }
  func.func @transform_1(%arg0: i32, %arg1: i32) -> (i32, i32) {
    %c0_i32 = arith.constant 0 : i32
    %c0_i32_0 = arith.constant 0 : i32
    return %c0_i32, %arg1 : i32, i32
  }
  func.func @transform_2(%arg0: i32, %arg1: i32) -> (i32, i32) {
    %c0_i32 = arith.constant 0 : i32
    %c0_i32_0 = arith.constant 0 : i32
    return %c0_i32, %arg1 : i32, i32
  }
  func.func @transform_3(%arg0: i32, %arg1: i32) -> (i32, i32) {
    %c0_i32 = arith.constant 0 : i32
    %c0_i32_0 = arith.constant 0 : i32
    return %arg1, %c0_i32 : i32, i32
  }
  func.func @transform_4(%arg0: i32, %arg1: i32) -> (i32, i32) {
    %c0_i32 = arith.constant 0 : i32
    %c0_i32_0 = arith.constant 0 : i32
    %c0_i32_1 = arith.constant 0 : i32
    return %c0_i32, %c0_i32_0 : i32, i32
  }
  func.func @transform_5(%arg0: i32, %arg1: i32) -> (i32, i32) {
    %c0_i32 = arith.constant 0 : i32
    %c0_i32_0 = arith.constant 0 : i32
    return %arg0, %c0_i32 : i32, i32
  }
}

</mosaic_0001>

<bundles_post_ra>
// kernel: tpu_custom_call.1
= control target key start
LH: loop header
LB: loop body
LE: loop exit
PB: predicated region body
PF: predicated region fallthrough
CT: control target
= control target key end

     0   :  { %10 = vsyncpa [#allocation4], 0  ;;  %s982_s0 = inlined_call_operand.hbm [shape: bf16[128,128], index: 0, kind: input, shape index: {}]   ;;  %s983_s1 = inlined_call_operand.hbm [shape: bf16[128,128], index: 1, kind: input, shape index: {}]   ;;  %s984_s2 = inlined_call_operand.vmem [shape: bf16[1,128], index: 2, kind: input, shape index: {}]   ;;  %s985_s3 = inlined_call_operand.hbm [shape: bf16[128,128], index: 3, kind: input, shape index: {}]   ;;  %s986_s4 = inlined_call_operand.vmem [shape: f32[1,128], index: 4, kind: input, shape index: {}]   ;;  %s987_s5 = inlined_call_operand.hbm [shape: f32[128,128], index: 5, kind: output, shape index: {}]  }
   0x1   :  { %11 = vsyncpa [#allocation7], 0 }
   0x2   :  { %12 = vsyncpa [#allocation5], 0  ;;  %s873_s18 = smov [#allocation6]   ;;  %s874_s20 = smov [#allocation3]  }
   0x3   :  { %s30_s19 = sshll.u32 %s873_s18, 4  ;;  %s18_s21 = sshll.u32 %s874_s20, 4  ;;  %s31_s19 = int_to_ptr.vmem [resolvable:$true] %s30_s19  ;;  %s912_s21 = int_to_ptr.vmem [resolvable:$true] %s18_s21 }
   0x4   :  { %s779_s24 = scalar_lea.hbm %s983_s1, 1024 }
   0x5   :  { %p780_p0 = scmp.ne.s32.totalorder %s983_s1, %s779_s24  ;;  %p783_p1 = scmp.lt.u32.totalorder %s779_s24, %s983_s1 }
   0x7   :  { %p785_p2 = pnand %p783_p1, %p780_p0 }
   0x9   :  { %788 = shalt.err (!%p785_p2)
}
   0xa   :  { %s789_s29 = scalar_lea.vmem %s31_s19, 1024  ;;  %p794_p4 = scmp.lt.s32.totalorder %s31_s19, %s31_s19 }
   0xb   :  { %p790_p3 = scmp.ne.s32.totalorder %s31_s19, %s789_s29  ;;  %p795_p5 = scmp.lt.s32.totalorder %s789_s29, %s789_s29 }
   0xd   :  { %p796_p6 = por %p795_p5, %p794_p4 }
   0xf   :  { %p797_p7 = pnand %p796_p6, %p790_p3 }
  0x11   :  { %800 = shalt.err (!%p797_p7)
}
  0x12   :  { %s875_s30 = smov 64   ;;  %s876_s6 = smov 4  }
  0x13   :  { %36 = dma.hbm_to_vmem [thread:$0]  %s983_s1, 1024, %s31_s19, [#allocation7], %s875_s30, %s875_s30, %s876_s6  }
  0x14   :  { %s801_s11 = scalar_lea.hbm %s982_s0, 1024 }
  0x15   :  { %p802_p8 = scmp.ne.s32.totalorder %s982_s0, %s801_s11  ;;  %p805_p9 = scmp.lt.u32.totalorder %s801_s11, %s982_s0 }
  0x17   :  { %p807_p10 = pnand %p805_p9, %p802_p8 }
  0x19   :  { %810 = shalt.err (!%p807_p10)
}
  0x1a   :  { %s811_s16 = scalar_lea.vmem %s912_s21, 1024  ;;  %p816_p12 = scmp.lt.s32.totalorder %s912_s21, %s912_s21 }
  0x1b   :  { %p812_p11 = scmp.ne.s32.totalorder %s912_s21, %s811_s16  ;;  %p817_p13 = scmp.lt.s32.totalorder %s811_s16, %s811_s16 }
  0x1d   :  { %p818_p0 = por %p817_p13, %p816_p12 }
  0x1f   :  { %p819_p1 = pnand %p818_p0, %p812_p11 }
  0x21   :  { %822 = shalt.err (!%p819_p1)
}
  0x22   :  { %24 = dma.hbm_to_vmem [thread:$0]  %s982_s0, 1024, %s912_s21, [#allocation4], %s875_s30, %s875_s30, %s876_s6  }
  0x23   :  { %s877_s18 = smov [#allocation8]   ;;  %s823_s23 = scalar_lea.hbm %s985_s3, 1024 }
  0x24   :  { %s44_s19 = sshll.u32 %s877_s18, 4  ;;  %p824_p2 = scmp.ne.s32.totalorder %s985_s3, %s823_s23  ;;  %s45_s19 = int_to_ptr.vmem [resolvable:$true] %s44_s19 }
  0x25   :  { %p827_p3 = scmp.lt.u32.totalorder %s823_s23, %s985_s3 }
  0x27   :  { %p829_p4 = pnand %p827_p3, %p824_p2 }
  0x29   :  { %832 = shalt.err (!%p829_p4)
}
  0x2a   :  { %s833_s28 = scalar_lea.vmem %s45_s19, 1024  ;;  %p838_p6 = scmp.lt.s32.totalorder %s45_s19, %s45_s19 }
  0x2b   :  { %p834_p5 = scmp.ne.s32.totalorder %s45_s19, %s833_s28  ;;  %p839_p7 = scmp.lt.s32.totalorder %s833_s28, %s833_s28 }
  0x2d   :  { %p840_p8 = por %p839_p7, %p838_p6 }
  0x2f   :  { %p841_p9 = pnand %p840_p8, %p834_p5 }
  0x31   :  { %844 = shalt.err (!%p841_p9)
}
  0x32   :  { %50 = dma.hbm_to_vmem [thread:$0]  %s985_s3, 1024, %s45_s19, [#allocation7], %s875_s30, %s875_s30, %s876_s6  }
  0x33   :  { %867 = dma.done.wait [#allocation4], 1024  }
  0x34   :  { %868 = vsyncadd [#allocation4], 4294966272 }
  0x35   :  { %869 = dma.done.wait [#allocation7], 2048  }
  0x36   :  { %870 = vsyncadd [#allocation7], 4294965248  ;;  %v755_v0 = vld [vmem:[#allocation6] sm:$0xff]   ;;  %v756_v1 = vld [vmem:[#allocation6 + $0x8] sm:$0xff]   ;;  %v320_v24 = vlaneseq  ;;  %v878_v39 = vmov 0  }
  0x37   :  { %682 = vmatprep.subr.bf16.mxu0 %v755_v0  ;;  %v757_v2 = vld [vmem:[#allocation6 + $0x10] sm:$0xff]   ;;  %v758_v3 = vld [vmem:[#allocation6 + $0x18] sm:$0xff]   ;;  %v763_v4 = vld [vmem:[#allocation3] sm:$0xff]  }
  0x38   :  { %683 = vmatpush3.bf16.msra.mxu0 %v755_v0  ;;  %698 = vmatprep.mubr.bf16.mxu0 %v763_v4  ;;  %v759_v5 = vld [vmem:[#allocation6 + $0x20] sm:$0xff]   ;;  %v760_v6 = vld [vmem:[#allocation6 + $0x28] sm:$0xff]   ;;  %v761_v9 = vld [vmem:[#allocation6 + $0x30] sm:$0xff]   ;;  %v321_v25 = vshrl.u32 %v320_v24, 7 }
  0x39   :  { %684 = vmatprep.subr.bf16.mxu0 %v756_v1  ;;  %v771_v7 = vld [vmem:[#allocation8] sm:$0xff]   ;;  %v772_v8 = vld [vmem:[#allocation8 + $0x8] sm:$0xff]   ;;  %v773_v10 = vld [vmem:[#allocation8 + $0x10] sm:$0xff]  }
  0x3a   :  { %714 = vmatprep.subr.bf16.mxu1 %v771_v7  ;;  %v762_v11 = vld [vmem:[#allocation6 + $0x38] sm:$0xff]   ;;  %v775_v13 = vld [vmem:[#allocation8 + $0x20] sm:$0xff]   ;;  %v764_v14 = vld [vmem:[#allocation3 + $0x8] sm:$0xff]   ;;  %v322_v28 = vsub.s32 0, %v321_v25 }
  0x3b   :  { %715 = vmatpush3.bf16.msra.mxu1 %v771_v7  ;;  %v774_v12 = vld [vmem:[#allocation8 + $0x18] sm:$0xff]   ;;  %v765_v15 = vld [vmem:[#allocation3 + $0x10] sm:$0xff]   ;;  %v776_v16 = vld [vmem:[#allocation8 + $0x28] sm:$0xff]  }
  0x3c   :  { %685 = vmatpush3.bf16.msra.mxu0 %v756_v1  ;;  %716 = vmatprep.subr.bf16.mxu1 %v772_v8  ;;  %v766_v17 = vld [vmem:[#allocation3 + $0x18] sm:$0xff]   ;;  %v767_v18 = vld [vmem:[#allocation3 + $0x20] sm:$0xff]   ;;  %v768_v19 = vld [vmem:[#allocation3 + $0x28] sm:$0xff]  }
  0x3d   :  { %686 = vmatprep.subr.bf16.mxu0 %v757_v2  ;;  %v769_v20 = vld [vmem:[#allocation3 + $0x30] sm:$0xff]   ;;  %v770_v21 = vld [vmem:[#allocation3 + $0x38] sm:$0xff]   ;;  %v316_v26 = vld [vmem:[%s984_s2] sm:$0x1] }
  0x3e   :  { %v777_v22 = vld [vmem:[#allocation8 + $0x30] sm:$0xff]   ;;  %v778_v23 = vld [vmem:[#allocation8 + $0x38] sm:$0xff]   ;;  %v318_v27 = vpack.i.b16 %v316_v26, %v316_v26  ;;  %v649_v7 = vld [vmem:[%s986_s4] ss:$0 sm:$0xff]  ;;  %s879_s4 = smov [#allocation9]  }
  0x3f   :  { %717 = vmatpush3.bf16.msra.mxu1 %v772_v8  ;;  %s612_s6 = sshll.u32 %s879_s4, 4  ;;  %s613_s6 = int_to_ptr.vmem [resolvable:$true] %s612_s6 }
  0x40   :  { %687 = vmatpush3.bf16.msra.mxu0 %v757_v2  ;;  %718 = vmatprep.subr.bf16.mxu1 %v773_v10  ;;  %v323_v31 = vrot.slane %v318_v27, %v322_v28  ;;  %s845_s7 = scalar_lea.vmem %s613_s6, 2048  ;;  %p850_p11 = scmp.lt.s32.totalorder %s613_s6, %s613_s6 }
  0x41   :  { %688 = vmatprep.subr.bf16.mxu0 %v758_v3  ;;  %p846_p10 = scmp.ne.s32.totalorder %s613_s6, %s845_s7  ;;  %p851_p12 = scmp.lt.s32.totalorder %s845_s7, %s845_s7 }
  0x43   :  { %719 = vmatpush3.bf16.msra.mxu1 %v773_v10  ;;  %p852_p13 = por %p851_p12, %p850_p11 }
  0x44   :  { %689 = vmatpush3.bf16.msra.mxu0 %v758_v3  ;;  %720 = vmatprep.subr.bf16.mxu1 %v774_v12 }
  0x45   :  { %690 = vmatprep.subr.bf16.mxu0 %v759_v5  ;;  %p853_p0 = pnand %p852_p13, %p846_p10 }
  0x47   :  { %721 = vmatpush3.bf16.msra.mxu1 %v774_v12 }
  0x48   :  { %691 = vmatpush3.bf16.msra.mxu0 %v759_v5  ;;  %722 = vmatprep.subr.bf16.mxu1 %v775_v13 }
  0x49   :  { %692 = vmatprep.subr.bf16.mxu0 %v760_v6 }
  0x4b   :  { %723 = vmatpush3.bf16.msra.mxu1 %v775_v13 }
  0x4c   :  { %693 = vmatpush3.bf16.msra.mxu0 %v760_v6  ;;  %724 = vmatprep.subr.bf16.mxu1 %v776_v16 }
  0x4d   :  { %694 = vmatprep.subr.bf16.mxu0 %v761_v9 }
  0x4f   :  { %725 = vmatpush3.bf16.msra.mxu1 %v776_v16 }
  0x50   :  { %695 = vmatpush3.bf16.msra.mxu0 %v761_v9  ;;  %726 = vmatprep.subr.bf16.mxu1 %v777_v22 }
  0x51   :  { %696 = vmatprep.subr.bf16.mxu0 %v762_v11 }
  0x53   :  { %727 = vmatpush3.bf16.msra.mxu1 %v777_v22 }
  0x54   :  { %697 = vmatpush3.bf16.msra.mxu0 %v762_v11  ;;  %728 = vmatprep.subr.bf16.mxu1 %v778_v23 }
  0x57   :  { %699 = vmatmul.mubr.bf16.vlgmr.msra.gmra.mrb[0].mxu0 %v764_v14  ;;  %729 = vmatpush3.bf16.msra.mxu1 %v778_v23 }
  0x58   :  { %702 = vmatprep.mubr.bf16.mxu0 %v765_v15 }
  0x5f   :  { %703 = vmatmul.mubr.bf16.gmra.mrb[4].mxu0 %v766_v17 }
  0x60   :  { %706 = vmatprep.mubr.bf16.mxu0 %v767_v18 }
  0x67   :  { %707 = vmatmul.mubr.bf16.gmra.mrb[8].mxu0 %v768_v19 }
  0x68   :  { %710 = vmatprep.mubr.bf16.mxu0 %v769_v20 }
  0x6f   :  { %711 = vmatmul.mubr.bf16.gmra.mrb[12].mxu0 %v770_v21 }
 0x12a   :  { %v700_v29 = vpop.f32.mrb[0].mxu0 }
 0x12b   :  { %v245_v30 = vpop.f32.mrb[1].mxu0 }
 0x12c   :  { %v701_v32 = vpop.f32.mrb[2].mxu0 }
 0x12d   :  { %v309_v33 = vpack.c.bf16 %v701_v32, %v700_v29  ;;  %v248_v34 = vpop.f32.mrb[3].mxu0 }
 0x12e   :  { %v308_v35 = vpack.c.bf16 %v248_v34, %v245_v30 }
 0x12f   :  { %v325_v36 = vadd.bf16 %v323_v31, %v309_v33 }
 0x130   :  { %v324_v37 = vadd.bf16 %v323_v31, %v308_v35 }
 0x131   :  { %v333_v42 = vmax.bf16 %v878_v39, %v325_v36 }
 0x132   :  { %v704_v38 = vpop.f32.mrb[4].mxu0  ;;  %v332_v40 = vmax.bf16 %v878_v39, %v324_v37 }
 0x133   :  { %v261_v41 = vpop.f32.mrb[5].mxu0 }
 0x134   :  { %v705_v43 = vpop.f32.mrb[6].mxu0  ;;  %730 = vmatprep.mubr.bf16.mxu1 %v332_v40 }
 0x135   :  { %v311_v44 = vpack.c.bf16 %v705_v43, %v704_v38  ;;  %v264_v45 = vpop.f32.mrb[7].mxu0  ;;  %731 = vmatmul.mubr.bf16.vlgmr.msra.gmra.mrb[0].mxu1 %v333_v42 }
 0x136   :  { %v310_v46 = vpack.c.bf16 %v264_v45, %v261_v41 }
 0x137   :  { %v327_v47 = vadd.bf16 %v323_v31, %v311_v44 }
 0x138   :  { %v326_v48 = vadd.bf16 %v323_v31, %v310_v46 }
 0x139   :  { %v335_v52 = vmax.bf16 %v878_v39, %v327_v47 }
 0x13a   :  { %v708_v49 = vpop.f32.mrb[8].mxu0  ;;  %v334_v50 = vmax.bf16 %v878_v39, %v326_v48 }
 0x13b   :  { %v277_v51 = vpop.f32.mrb[9].mxu0 }
 0x13c   :  { %v709_v53 = vpop.f32.mrb[10].mxu0  ;;  %734 = vmatprep.mubr.bf16.mxu1 %v334_v50 }
 0x13d   :  { %v313_v54 = vpack.c.bf16 %v709_v53, %v708_v49  ;;  %v280_v55 = vpop.f32.mrb[11].mxu0  ;;  %735 = vmatmul.mubr.bf16.gmra.mrb[4].mxu1 %v335_v52 }
 0x13e   :  { %v312_v56 = vpack.c.bf16 %v280_v55, %v277_v51 }
 0x13f   :  { %v329_v57 = vadd.bf16 %v323_v31, %v313_v54 }
 0x140   :  { %v328_v58 = vadd.bf16 %v323_v31, %v312_v56 }
 0x141   :  { %v337_v62 = vmax.bf16 %v878_v39, %v329_v57 }
 0x142   :  { %v712_v59 = vpop.f32.mrb[12].mxu0  ;;  %v336_v60 = vmax.bf16 %v878_v39, %v328_v58 }
 0x143   :  { %v293_v61 = vpop.f32.mrb[13].mxu0 }
 0x144   :  { %v713_v63 = vpop.f32.mrb[14].mxu0  ;;  %738 = vmatprep.mubr.bf16.mxu1 %v336_v60 }
 0x145   :  { %v315_v0 = vpack.c.bf16 %v713_v63, %v712_v59  ;;  %v296_v1 = vpop.f32.mrb[15].mxu0  ;;  %739 = vmatmul.mubr.bf16.gmra.mrb[8].mxu1 %v337_v62 }
 0x146   :  { %v314_v2 = vpack.c.bf16 %v296_v1, %v293_v61 }
 0x147   :  { %v331_v3 = vadd.bf16 %v323_v31, %v315_v0 }
 0x148   :  { %v330_v4 = vadd.bf16 %v323_v31, %v314_v2 }
 0x149   :  { %v339_v6 = vmax.bf16 %v878_v39, %v331_v3 }
 0x14a   :  { %v338_v5 = vmax.bf16 %v878_v39, %v330_v4 }
 0x14c   :  { %742 = vmatprep.mubr.bf16.mxu1 %v338_v5 }
 0x14d   :  { %743 = vmatmul.mubr.bf16.gmra.mrb[12].mxu1 %v339_v6 }
 0x208   :  { %v732_v8 = vpop.f32.mrb[0].mxu1 }
 0x209   :  { %v577_v9 = vadd.f32 %v732_v8, %v649_v7  ;;  %v454_v10 = vpop.f32.mrb[1].mxu1 }
 0x20a   :  { %v575_v11 = vadd.f32 %v649_v7, %v454_v10  ;;  %v733_v12 = vpop.f32.mrb[2].mxu1 }
 0x20b   :  { %593 = vst [vmem:[#allocation9 + $0x10] sm:$0xff] %v577_v9  ;;  %v578_v13 = vadd.f32 %v733_v12, %v649_v7  ;;  %v457_v14 = vpop.f32.mrb[3].mxu1 }
 0x20c   :  { %591 = vst [vmem:[#allocation9] sm:$0xff] %v575_v11  ;;  %v576_v15 = vadd.f32 %v649_v7, %v457_v14 }
 0x20d   :  { %594 = vst [vmem:[#allocation9 + $0x18] sm:$0xff] %v578_v13 }
 0x20e   :  { %592 = vst [vmem:[#allocation9 + $0x8] sm:$0xff] %v576_v15 }
 0x210   :  { %v736_v16 = vpop.f32.mrb[4].mxu1 }
 0x211   :  { %v581_v17 = vadd.f32 %v736_v16, %v649_v7  ;;  %v470_v18 = vpop.f32.mrb[5].mxu1 }
 0x212   :  { %v579_v19 = vadd.f32 %v649_v7, %v470_v18  ;;  %v737_v20 = vpop.f32.mrb[6].mxu1 }
 0x213   :  { %597 = vst [vmem:[#allocation9 + $0x30] sm:$0xff] %v581_v17  ;;  %v582_v21 = vadd.f32 %v737_v20, %v649_v7  ;;  %v473_v22 = vpop.f32.mrb[7].mxu1 }
 0x214   :  { %595 = vst [vmem:[#allocation9 + $0x20] sm:$0xff] %v579_v19  ;;  %v580_v23 = vadd.f32 %v649_v7, %v473_v22 }
 0x215   :  { %598 = vst [vmem:[#allocation9 + $0x38] sm:$0xff] %v582_v21 }
 0x216   :  { %596 = vst [vmem:[#allocation9 + $0x28] sm:$0xff] %v580_v23 }
 0x218   :  { %v740_v24 = vpop.f32.mrb[8].mxu1 }
 0x219   :  { %v585_v25 = vadd.f32 %v740_v24, %v649_v7  ;;  %v486_v26 = vpop.f32.mrb[9].mxu1 }
 0x21a   :  { %v583_v27 = vadd.f32 %v649_v7, %v486_v26  ;;  %v741_v28 = vpop.f32.mrb[10].mxu1 }
 0x21b   :  { %601 = vst [vmem:[#allocation9 + $0x50] sm:$0xff] %v585_v25  ;;  %v586_v29 = vadd.f32 %v741_v28, %v649_v7  ;;  %v489_v30 = vpop.f32.mrb[11].mxu1 }
 0x21c   :  { %599 = vst [vmem:[#allocation9 + $0x40] sm:$0xff] %v583_v27  ;;  %v584_v31 = vadd.f32 %v649_v7, %v489_v30 }
 0x21d   :  { %602 = vst [vmem:[#allocation9 + $0x58] sm:$0xff] %v586_v29 }
 0x21e   :  { %600 = vst [vmem:[#allocation9 + $0x48] sm:$0xff] %v584_v31 }
 0x220   :  { %v744_v32 = vpop.f32.mrb[12].mxu1 }
 0x221   :  { %v589_v33 = vadd.f32 %v744_v32, %v649_v7  ;;  %v502_v34 = vpop.f32.mrb[13].mxu1 }
 0x222   :  { %v587_v35 = vadd.f32 %v649_v7, %v502_v34  ;;  %v745_v36 = vpop.f32.mrb[14].mxu1 }
 0x223   :  { %605 = vst [vmem:[#allocation9 + $0x70] sm:$0xff] %v589_v33  ;;  %v590_v37 = vadd.f32 %v745_v36, %v649_v7  ;;  %v505_v38 = vpop.f32.mrb[15].mxu1 }
 0x224   :  { %603 = vst [vmem:[#allocation9 + $0x60] sm:$0xff] %v587_v35  ;;  %v588_v39 = vadd.f32 %v649_v7, %v505_v38 }
 0x225   :  { %606 = vst [vmem:[#allocation9 + $0x78] sm:$0xff] %v590_v37 }
 0x226   :  { %604 = vst [vmem:[#allocation9 + $0x68] sm:$0xff] %v588_v39 }
 0x227   :  { %856 = shalt.err (!%p853_p0)
}
 0x228   :  { %s857_s10 = scalar_lea.hbm %s987_s5, 2048 }
 0x229   :  { %p858_p1 = scmp.ne.s32.totalorder %s987_s5, %s857_s10  ;;  %p861_p2 = scmp.lt.u32.totalorder %s857_s10, %s987_s5 }
 0x22b   :  { %p863_p3 = pnand %p861_p2, %p858_p1 }
 0x22d   :  { %866 = shalt.err (!%p863_p3)
}
 0x22e   :  { %s880_s15 = smov 128   ;;  %s881_s16 = smov 8  }
 0x22f   :  { %618 = dma.vmem_to_hbm [thread:$0]  %s613_s6, 2048, %s987_s5, [#allocation5], %s880_s15, %s880_s15, %s881_s16  }
 0x230   :  { %871 = dma.done.wait [#allocation5], 2048  }
 0x231   :  { %872 = vsyncadd [#allocation5], 4294965248 }
 0x232   :  { %622 = vsyncpa [#allocation4], 1 }
 0x233   :  { %623 = vsyncpa [#allocation7], 1 }
 0x234   :  { %624 = vsyncpa [#allocation5], 1 }

</bundles_post_ra>
